<compile_context>
chip_gen: v6e
topology: v6e:2x2x1
jax: 0.10.0
libtpu: 0.0.40
codegen_flags: <defaults>
</compile_context>

<pallas_src>
import jax
import jax.numpy as jnp
import numpy as np
from jax import lax
from jax.experimental import pallas as pl
from jax.experimental.pallas import tpu as pltpu

# ---- model hyper-parameters (small, consistent with module __init__) --------
B = 4                       # batch
MAX_CHAR_LEN = 12           # max_char_length
MAX_WORD_LEN = 8            # max_word_length
CHAR_EMB = 16               # character embedding size
WORD_EMB = 32               # word embedding size
FILTER_COUNT = 8            # filter_count
CHAR_KERNEL_WIDTHS = (2, 3)
WORD_KERNEL_WIDTHS = (2, 3)
NCHARS = 30                 # len(char_to_id)
NWORDS = 50                 # len(word_to_id)
NLABELS = 5                 # len(label_to_id)
FEATURE_DIM = (len(CHAR_KERNEL_WIDTHS) + len(WORD_KERNEL_WIDTHS)) * FILTER_COUNT

LANE_PAD = 128              # lane-dense block width (one f32 vreg of lanes)
K_MAX = max(CHAR_KERNEL_WIDTHS + WORD_KERNEL_WIDTHS)
FUSED_VOCAB = NCHARS + NWORDS
T_POOL = max(MAX_CHAR_LEN - min(CHAR_KERNEL_WIDTHS) + 1,
             MAX_WORD_LEN - min(WORD_KERNEL_WIDTHS) + 1)
T_PAD = -(-T_POOL // 8) * 8          # pooling-position axis padded to 8 sublanes

# Guard the edge case the review flagged: a sequence shorter than the widest
# kernel would make a max-pool window empty (torch would error).
assert MAX_CHAR_LEN >= max(CHAR_KERNEL_WIDTHS), "char sequence shorter than widest kernel"
assert MAX_WORD_LEN >= max(WORD_KERNEL_WIDTHS), "word sequence shorter than widest kernel"
assert FEATURE_DIM <= LANE_PAD


# ---- Pallas kernel -----------------------------------------------------------
def _cnn_kernel(hot_ref, w_ref, cb_ref, mask_ref, hw_ref, hb_ref, o_ref):
    """Single invocation: fused (embedding + all convs of both branches) via one
    multi-hot MXU matmul, masked max-pool, bias+ReLU, linear head, log_softmax."""
    batch = o_ref.shape[0]
    n_hot, rows, _ = hot_ref.shape
    t_pad = rows // batch
    k_rows = w_ref.shape[0]          # K_MAX * FUSED_VOCAB
    lanes = w_ref.shape[1]           # LANE_PAD

    # Multi-hot over the fused (tap, vocab) row axis: row (b, tau) carries a 1
    # at i*FUSED_VOCAB + char_id[tau+i] and i*FUSED_VOCAB + NCHARS + word_id[tau+i]
    # for every tap i (offsets baked in on the host, ranges are disjoint so OR
    # is exact).  One matmul then yields the conv scores of every width of both
    # branches at every pooling position: char filters in lanes [0,16), word
    # filters in lanes [16,32), pad lanes zero.
    iota_v = lax.broadcasted_iota(jnp.int32, (rows, k_rows), 1)
    hit = iota_v == hot_ref[0]
    for j in range(1, n_hot):
        hit = hit | (iota_v == hot_ref[j])
    onehot = jnp.where(hit, 1.0, 0.0).astype(jnp.float32)
    s = jnp.dot(onehot, w_ref[...], preferred_element_type=jnp.float32)   # (rows, 128)

    # 8-aligned reshape into per-example slabs (t_pad is a multiple of 8, so no
    # relayout), add the host-baked static validity mask (0 / -1e30), max-pool
    # over positions, then bias + ReLU (relu(x+b) commutes with the max).
    s = s.reshape(batch, t_pad, lanes) + mask_ref[...]                    # (B, T, 128)
    pooled = jnp.max(s, axis=1)                                           # (B, 128)
    feats = jnp.maximum(pooled + cb_ref[...], 0.0)

    # TODO(synk): torch Dropout is identity at inference; training-mode dropout
    # (random masking) is not implemented here.

    # Single lane-dense head matmul; pad logits carry a -1e30 bias -> prob 0.
    logits = jnp.dot(feats, hw_ref[...], preferred_element_type=jnp.float32) + hb_ref[...]
    m = jnp.max(logits, axis=-1, keepdims=True)
    lse = m + jnp.log(jnp.sum(jnp.exp(logits - m), axis=-1, keepdims=True))
    o_ref[...] = logits - lse                                             # log_softmax


def _full_spec(shape):
    return pl.BlockSpec(shape, lambda *_: (0,) * len(shape))


def _build_hot_ids(cx_ids, wx_ids):
    """(B,Lc),(B,Lw) int ids -> (2*K_MAX, B*T_PAD, 1) fused-table row indices.

    hot[2*i]   = i*FUSED_VOCAB + char_id[tau+i]
    hot[2*i+1] = i*FUSED_VOCAB + NCHARS + word_id[tau+i]
    Out-of-range taps use id 0; they only feed masked positions / zero columns."""
    batch = cx_ids.shape[0]

    def shifted(ids, tap):
        pad = max(0, T_PAD + K_MAX - 1 - ids.shape[1])
        padded = jnp.pad(ids.astype(jnp.int32), ((0, 0), (0, pad)))
        return padded[:, tap:tap + T_PAD]                      # (B, T_PAD)

    cols = []
    for i in range(K_MAX):
        cols.append(i * FUSED_VOCAB + shifted(cx_ids, i))            # char stream
        cols.append(i * FUSED_VOCAB + NCHARS + shifted(wx_ids, i))   # word stream
    return jnp.stack(cols, axis=0).reshape(2 * K_MAX, batch * T_PAD, 1)


@jax.jit
def cnn_forward(cx_ids, wx_ids, prepared):
    """cx_ids: (B, Lc) int32, wx_ids: (B, Lw) int32, prepared = prepare_params(...)."""
    w_fused, conv_b, mask, head_w, head_b = prepared
    batch = cx_ids.shape[0]
    hot = _build_hot_ids(cx_ids, wx_ids)

    in_arrays = [hot, w_fused, conv_b, mask, head_w, head_b]
    out = pl.pallas_call(
        _cnn_kernel,
        out_shape=jax.ShapeDtypeStruct((batch, LANE_PAD), jnp.float32),
        grid=(1,),
        in_specs=[_full_spec(a.shape) for a in in_arrays],
        out_specs=_full_spec((batch, LANE_PAD)),
        compiler_params=pltpu.CompilerParams(
            # Single grid step: total VMEM footprint is < 0.5 MiB, far below the
            # default scoped limit on v5e/v6e/v7x.  For a large serving batch,
            # tile the B*T_PAD row axis here, mark it "parallel" (engages the
            # second v7x TensorCore) and give the weight/mask BlockSpecs a
            # constant index_map so they stay resident across grid steps.
            dimension_semantics=("arbitrary",)),
    )(*in_arrays)
    return out[:, :NLABELS]


# ---- one-time host-side weight folding ---------------------------------------
def prepare_params(char_table, word_table, conv_params, lin_w, lin_b):
    """Fold the embedding tables into the conv weights, stack both branches into
    one fused (K_MAX*FUSED_VOCAB, 128) table, and bake the static validity mask.

    conv_params: list of (w (F, k, E), b (F,)) for char widths then word widths
    (torch Conv1d weight.squeeze(1)).  lin_w: (NLABELS, FEATURE_DIM),
    lin_b: (NLABELS,) (torch Linear).  Returns device arrays for cnn_forward."""
    w_fused = np.zeros((K_MAX * FUSED_VOCAB, LANE_PAD), np.float32)
    conv_b = np.zeros((1, LANE_PAD), np.float32)
    mask = np.full((1, T_PAD, LANE_PAD), -1e30, np.float32)

    idx, lane0 = 0, 0
    for widths, table, voff, length in (
            (CHAR_KERNEL_WIDTHS, char_table, 0, MAX_CHAR_LEN),
            (WORD_KERNEL_WIDTHS, word_table, NCHARS, MAX_WORD_LEN)):
        table_np = np.asarray(table, np.float32)
        for wi, k in enumerate(widths):
            w, b = conv_params[idx]
            idx += 1
            w_np = np.asarray(w, np.float32)                 # (F, k, E)
            lo = lane0 + wi * FILTER_COUNT
            for i in range(k):
                # table @ W[:, tap i, :].T : (V, E) @ (E, F) -> (V, F)
                r0 = i * FUSED_VOCAB + voff
                w_fused[r0:r0 + table_np.shape[0], lo:lo + FILTER_COUNT] = (
                    table_np @ w_np[:, i, :].T)
            conv_b[0, lo:lo + FILTER_COUNT] = np.asarray(b, np.float32)
            mask[0, :length - k + 1, lo:lo + FILTER_COUNT] = 0.0   # valid positions
        lane0 += len(widths) * FILTER_COUNT

    lin_wT = np.asarray(lin_w, np.float32).T                 # (FEATURE_DIM, NLABELS)
    head_w = np.zeros((LANE_PAD, LANE_PAD), np.float32)
    head_w[:lin_wT.shape[0], :NLABELS] = lin_wT
    head_b = np.full((1, LANE_PAD), -1e30, np.float32)       # pad logits -> prob 0
    head_b[0, :NLABELS] = np.asarray(lin_b, np.float32)
    return (jnp.asarray(w_fused), jnp.asarray(conv_b), jnp.asarray(mask),
            jnp.asarray(head_w), jnp.asarray(head_b))


# ---- pure-JAX reference (torch-layout params, for correctness check) ---------
def cnn_reference(cx_ids, wx_ids, char_table, word_table, conv_params, lin_w, lin_b):
    pooled = []
    idx = 0
    for widths, table, ids in ((CHAR_KERNEL_WIDTHS, char_table, cx_ids),
                               (WORD_KERNEL_WIDTHS, word_table, wx_ids)):
        emb = jnp.take(table, ids, axis=0)                   # (B, L, E)
        length = emb.shape[1]
        for k in widths:
            w, bias = conv_params[idx]
            idx += 1
            t = length - k + 1
            s = sum(jnp.einsum("bte,fe->btf", emb[:, i:i + t, :], w[:, i, :],
                               precision="highest") for i in range(k)) + bias
            pooled.append(jnp.max(jnp.maximum(s, 0.0), axis=1))
    feats = jnp.concatenate(pooled, axis=-1)
    logits = jnp.dot(feats, lin_w.T, precision="highest") + lin_b
    return jax.nn.log_softmax(logits, axis=-1)


# ---- parameter / input construction ------------------------------------------
def make_params(key):
    keys = jax.random.split(key, 16)
    ki = iter(keys)

    # Embedding tables (padding_idx=0 -> row 0 zero, as in the torch module).
    char_table = jax.random.normal(next(ki), (NCHARS, CHAR_EMB), jnp.float32) * 0.1
    char_table = char_table.at[0].set(0.0)
    word_table = jax.random.normal(next(ki), (NWORDS, WORD_EMB), jnp.float32) * 0.1
    word_table = word_table.at[0].set(0.0)

    # torch-layout conv weights: Conv1d(1, F, (k, E)).weight.squeeze(1) -> (F, k, E)
    conv_params = []
    for widths, emb in ((CHAR_KERNEL_WIDTHS, CHAR_EMB), (WORD_KERNEL_WIDTHS, WORD_EMB)):
        for k in widths:
            w = jax.random.normal(next(ki), (FILTER_COUNT, k, emb), jnp.float32) * 0.1
            b = jax.random.normal(next(ki), (FILTER_COUNT,), jnp.float32) * 0.1
            conv_params.append((w, b))

    # torch-layout Linear: weight (NLABELS, FEATURE_DIM), bias (NLABELS,)
    lin_w = jax.random.normal(next(ki), (NLABELS, FEATURE_DIM), jnp.float32) * 0.1
    lin_b = jax.random.normal(next(ki), (NLABELS,), jnp.float32) * 0.1
    return char_table, word_table, conv_params, lin_w, lin_b


if __name__ == "__main__":
    key = jax.random.PRNGKey(0)
    k_params, k_cx, k_wx = jax.random.split(key, 3)

    char_table, word_table, conv_params, lin_w, lin_b = make_params(k_params)

    # Integer id inputs, as the torch module receives them.
    cx_ids = jax.random.randint(k_cx, (B, MAX_CHAR_LEN), 0, NCHARS, jnp.int32)
    wx_ids = jax.random.randint(k_wx, (B, MAX_WORD_LEN), 0, NWORDS, jnp.int32)

    prepared = prepare_params(char_table, word_table, conv_params, lin_w, lin_b)

    out = cnn_forward(cx_ids, wx_ids, prepared)
    out = jax.block_until_ready(out)

    ref = cnn_reference(cx_ids, wx_ids, char_table, word_table, conv_params,
                        lin_w, lin_b)
    np.testing.assert_allclose(np.asarray(out), np.asarray(ref),
                               rtol=1e-5, atol=1e-5)

    print("KERNEL_OK")
</pallas_src>

<mosaic_0001>
module attributes {stable_mosaic.version = 11 : i64} {
  func.func @_cnn_kernel(%arg0: i32, %arg1: memref<6x64x1xi32, #tpu.memory_space<vmem>>, %arg2: memref<240x128xf32, #tpu.memory_space<vmem>>, %arg3: memref<1x128xf32, #tpu.memory_space<vmem>>, %arg4: memref<1x16x128xf32, #tpu.memory_space<vmem>>, %arg5: memref<128x128xf32, #tpu.memory_space<vmem>>, %arg6: memref<1x128xf32, #tpu.memory_space<vmem>>, %arg7: memref<4x128xf32, #tpu.memory_space<vmem>>) attributes {dimension_semantics = [#tpu.dimension_semantics<arbitrary>], iteration_bounds = array<i64: 1>, scalar_prefetch = 0 : i64, scratch_operands = 0 : i64, tpu.core_type = #tpu.core_type<tc>, window_params = [{pipeline_mode = #tpu.pipeline_mode<synchronous>, transform_indices = @transform_0, window_bounds = array<i64: 6, 64, 1>}, {pipeline_mode = #tpu.pipeline_mode<synchronous>, transform_indices = @transform_1, window_bounds = array<i64: 240, 128>}, {pipeline_mode = #tpu.pipeline_mode<synchronous>, transform_indices = @transform_2, window_bounds = array<i64: 1, 128>}, {pipeline_mode = #tpu.pipeline_mode<synchronous>, transform_indices = @transform_3, window_bounds = array<i64: 1, 16, 128>}, {pipeline_mode = #tpu.pipeline_mode<synchronous>, transform_indices = @transform_4, window_bounds = array<i64: 128, 128>}, {pipeline_mode = #tpu.pipeline_mode<synchronous>, transform_indices = @transform_5, window_bounds = array<i64: 1, 128>}, {pipeline_mode = #tpu.pipeline_mode<synchronous>, transform_indices = @transform_6, window_bounds = array<i64: 4, 128>}]} {
    %0 = tpu.iota {dimensions = array<i32: 1>} : vector<64x240xi32>
    %c0 = arith.constant 0 : index
    %c0_0 = arith.constant 0 : index
    %c0_1 = arith.constant 0 : index
    %1 = vector.load %arg1[%c0, %c0_0, %c0_1] : memref<6x64x1xi32, #tpu.memory_space<vmem>>, vector<1x64x1xi32>
    %2 = vector.shape_cast %1 : vector<1x64x1xi32> to vector<64x1xi32>
    %3 = vector.broadcast %2 : vector<64x1xi32> to vector<64x240xi32>
    %4 = arith.cmpi eq, %0, %3 : vector<64x240xi32>
    %c1 = arith.constant 1 : index
    %c0_2 = arith.constant 0 : index
    %c0_3 = arith.constant 0 : index
    %5 = vector.load %arg1[%c1, %c0_2, %c0_3] : memref<6x64x1xi32, #tpu.memory_space<vmem>>, vector<1x64x1xi32>
    %6 = vector.shape_cast %5 : vector<1x64x1xi32> to vector<64x1xi32>
    %7 = vector.broadcast %6 : vector<64x1xi32> to vector<64x240xi32>
    %8 = arith.cmpi eq, %0, %7 : vector<64x240xi32>
    %9 = arith.ori %4, %8 : vector<64x240xi1>
    %c2 = arith.constant 2 : index
    %c0_4 = arith.constant 0 : index
    %c0_5 = arith.constant 0 : index
    %10 = vector.load %arg1[%c2, %c0_4, %c0_5] : memref<6x64x1xi32, #tpu.memory_space<vmem>>, vector<1x64x1xi32>
    %11 = vector.shape_cast %10 : vector<1x64x1xi32> to vector<64x1xi32>
    %12 = vector.broadcast %11 : vector<64x1xi32> to vector<64x240xi32>
    %13 = arith.cmpi eq, %0, %12 : vector<64x240xi32>
    %14 = arith.ori %9, %13 : vector<64x240xi1>
    %c3 = arith.constant 3 : index
    %c0_6 = arith.constant 0 : index
    %c0_7 = arith.constant 0 : index
    %15 = vector.load %arg1[%c3, %c0_6, %c0_7] : memref<6x64x1xi32, #tpu.memory_space<vmem>>, vector<1x64x1xi32>
    %16 = vector.shape_cast %15 : vector<1x64x1xi32> to vector<64x1xi32>
    %17 = vector.broadcast %16 : vector<64x1xi32> to vector<64x240xi32>
    %18 = arith.cmpi eq, %0, %17 : vector<64x240xi32>
    %19 = arith.ori %14, %18 : vector<64x240xi1>
    %c4 = arith.constant 4 : index
    %c0_8 = arith.constant 0 : index
    %c0_9 = arith.constant 0 : index
    %20 = vector.load %arg1[%c4, %c0_8, %c0_9] : memref<6x64x1xi32, #tpu.memory_space<vmem>>, vector<1x64x1xi32>
    %21 = vector.shape_cast %20 : vector<1x64x1xi32> to vector<64x1xi32>
    %22 = vector.broadcast %21 : vector<64x1xi32> to vector<64x240xi32>
    %23 = arith.cmpi eq, %0, %22 : vector<64x240xi32>
    %24 = arith.ori %19, %23 : vector<64x240xi1>
    %c5 = arith.constant 5 : index
    %c0_10 = arith.constant 0 : index
    %c0_11 = arith.constant 0 : index
    %25 = vector.load %arg1[%c5, %c0_10, %c0_11] : memref<6x64x1xi32, #tpu.memory_space<vmem>>, vector<1x64x1xi32>
    %26 = vector.shape_cast %25 : vector<1x64x1xi32> to vector<64x1xi32>
    %27 = vector.broadcast %26 : vector<64x1xi32> to vector<64x240xi32>
    %28 = arith.cmpi eq, %0, %27 : vector<64x240xi32>
    %29 = arith.ori %24, %28 : vector<64x240xi1>
    %cst = arith.constant 1.000000e+00 : f32
    %cst_12 = arith.constant 0.000000e+00 : f32
    %30 = vector.broadcast %cst : f32 to vector<64x240xf32>
    %31 = vector.broadcast %cst_12 : f32 to vector<64x240xf32>
    %32 = arith.select %29, %30, %31 : vector<64x240xi1>, vector<64x240xf32>
    %c0_13 = arith.constant 0 : index
    %c0_14 = arith.constant 0 : index
    %33 = vector.load %arg2[%c0_13, %c0_14] : memref<240x128xf32, #tpu.memory_space<vmem>>, vector<240x128xf32>
    %cst_15 = arith.constant dense<0.000000e+00> : vector<64x128xf32>
    %34 = tpu.matmul %32, %33, %cst_15 {dimension_numbers = #tpu.dot_dimension_numbers<[1], [0], [0], [1], [0, 0, 1, 1], [], []>} : vector<64x240xf32>, vector<240x128xf32>, vector<64x128xf32> -> vector<64x128xf32>
    %35 = vector.shape_cast %34 : vector<64x128xf32> to vector<4x16x128xf32>
    %c0_16 = arith.constant 0 : index
    %c0_17 = arith.constant 0 : index
    %c0_18 = arith.constant 0 : index
    %36 = vector.load %arg4[%c0_16, %c0_17, %c0_18] : memref<1x16x128xf32, #tpu.memory_space<vmem>>, vector<1x16x128xf32>
    %37 = vector.broadcast %36 : vector<1x16x128xf32> to vector<4x16x128xf32>
    %38 = arith.addf %35, %37 : vector<4x16x128xf32>
    %cst_19 = arith.constant dense<0xFF800000> : vector<4x128xf32>
    %39 = vector.multi_reduction <maximumf>, %38, %cst_19 [1] : vector<4x16x128xf32> to vector<4x128xf32>
    %c0_20 = arith.constant 0 : index
    %c0_21 = arith.constant 0 : index
    %40 = vector.load %arg3[%c0_20, %c0_21] : memref<1x128xf32, #tpu.memory_space<vmem>>, vector<1x128xf32>
    %41 = vector.broadcast %40 : vector<1x128xf32> to vector<4x128xf32>
    %42 = arith.addf %39, %41 : vector<4x128xf32>
    %cst_22 = arith.constant 0.000000e+00 : f32
    %43 = vector.broadcast %cst_22 : f32 to vector<4x128xf32>
    %44 = arith.maximumf %42, %43 : vector<4x128xf32>
    %c0_23 = arith.constant 0 : index
    %c0_24 = arith.constant 0 : index
    %45 = vector.load %arg5[%c0_23, %c0_24] : memref<128x128xf32, #tpu.memory_space<vmem>>, vector<128x128xf32>
    %cst_25 = arith.constant dense<0.000000e+00> : vector<4x128xf32>
    %46 = tpu.matmul %44, %45, %cst_25 {dimension_numbers = #tpu.dot_dimension_numbers<[1], [0], [0], [1], [0, 0, 1, 1], [], []>} : vector<4x128xf32>, vector<128x128xf32>, vector<4x128xf32> -> vector<4x128xf32>
    %c0_26 = arith.constant 0 : index
    %c0_27 = arith.constant 0 : index
    %47 = vector.load %arg6[%c0_26, %c0_27] : memref<1x128xf32, #tpu.memory_space<vmem>>, vector<1x128xf32>
    %48 = vector.broadcast %47 : vector<1x128xf32> to vector<4x128xf32>
    %49 = arith.addf %46, %48 : vector<4x128xf32>
    %cst_28 = arith.constant dense<0xFF800000> : vector<4xf32>
    %50 = vector.multi_reduction <maximumf>, %49, %cst_28 [1] : vector<4x128xf32> to vector<4xf32>
    %51 = vector.shape_cast %50 : vector<4xf32> to vector<4x1xf32>
    %52 = vector.broadcast %51 : vector<4x1xf32> to vector<4x128xf32>
    %53 = arith.subf %49, %52 : vector<4x128xf32>
    %54 = math.exp %53 : vector<4x128xf32>
    %cst_29 = arith.constant dense<0.000000e+00> : vector<4xf32>
    %55 = vector.multi_reduction <add>, %54, %cst_29 [1] : vector<4x128xf32> to vector<4xf32>
    %56 = vector.shape_cast %55 : vector<4xf32> to vector<4x1xf32>
    %57 = math.log %56 : vector<4x1xf32>
    %58 = arith.addf %51, %57 : vector<4x1xf32>
    %59 = vector.broadcast %58 : vector<4x1xf32> to vector<4x128xf32>
    %60 = arith.subf %49, %59 : vector<4x128xf32>
    %c0_30 = arith.constant 0 : index
    %c0_31 = arith.constant 0 : index
    %61 = vector.load %arg7[%c0_30, %c0_31] : memref<4x128xf32, #tpu.memory_space<vmem>>, vector<4x128xf32>
    tpu.vector_store %arg7[%c0_30, %c0_31], %60 {strides = array<i32>} : memref<4x128xf32, #tpu.memory_space<vmem>>, vector<4x128xf32>,
    return
  }
  func.func @transform_0(%arg0: i32) -> (i32, i32, i32) {
    %c0_i32 = arith.constant 0 : i32
    %c0_i32_0 = arith.constant 0 : i32
    %c0_i32_1 = arith.constant 0 : i32
    %c0_i32_2 = arith.constant 0 : i32
    return %c0_i32, %c0_i32_0, %c0_i32_1 : i32, i32, i32
  }
  func.func @transform_1(%arg0: i32) -> (i32, i32) {
    %c0_i32 = arith.constant 0 : i32
    %c0_i32_0 = arith.constant 0 : i32
    %c0_i32_1 = arith.constant 0 : i32
    return %c0_i32, %c0_i32_0 : i32, i32
  }
  func.func @transform_2(%arg0: i32) -> (i32, i32) {
    %c0_i32 = arith.constant 0 : i32
    %c0_i32_0 = arith.constant 0 : i32
    %c0_i32_1 = arith.constant 0 : i32
    return %c0_i32, %c0_i32_0 : i32, i32
  }
  func.func @transform_3(%arg0: i32) -> (i32, i32, i32) {
    %c0_i32 = arith.constant 0 : i32
    %c0_i32_0 = arith.constant 0 : i32
    %c0_i32_1 = arith.constant 0 : i32
    %c0_i32_2 = arith.constant 0 : i32
    return %c0_i32, %c0_i32_0, %c0_i32_1 : i32, i32, i32
  }
  func.func @transform_4(%arg0: i32) -> (i32, i32) {
    %c0_i32 = arith.constant 0 : i32
    %c0_i32_0 = arith.constant 0 : i32
    %c0_i32_1 = arith.constant 0 : i32
    return %c0_i32, %c0_i32_0 : i32, i32
  }
  func.func @transform_5(%arg0: i32) -> (i32, i32) {
    %c0_i32 = arith.constant 0 : i32
    %c0_i32_0 = arith.constant 0 : i32
    %c0_i32_1 = arith.constant 0 : i32
    return %c0_i32, %c0_i32_0 : i32, i32
  }
  func.func @transform_6(%arg0: i32) -> (i32, i32) {
    %c0_i32 = arith.constant 0 : i32
    %c0_i32_0 = arith.constant 0 : i32
    %c0_i32_1 = arith.constant 0 : i32
    return %c0_i32, %c0_i32_0 : i32, i32
  }
}

</mosaic_0001>

<bundles_post_ra>
// kernel: cnn_forward.1
= control target key start
LH: loop header
LB: loop body
LE: loop exit
PB: predicated region body
PF: predicated region fallthrough
CT: control target
= control target key end

     0   :  { %v899_v2 = vmov 0   ;;  %v900_v5 = vmov 0.0   ;;  %s1413_s0 = inlined_call_operand.vmem [shape: s32[6,64,1], index: 0, kind: input, shape index: {}]   ;;  %s1414_s1 = inlined_call_operand.vmem [shape: f32[240,128], index: 1, kind: input, shape index: {}]   ;;  %s1415_s2 = inlined_call_operand.vmem [shape: f32[1,128], index: 2, kind: input, shape index: {}]   ;;  %s1416_s3 = inlined_call_operand.vmem [shape: f32[1,16,128], index: 3, kind: input, shape index: {}]   ;;  %s1417_s4 = inlined_call_operand.vmem [shape: f32[128,128], index: 4, kind: input, shape index: {}]   ;;  %s1418_s5 = inlined_call_operand.vmem [shape: f32[1,128], index: 5, kind: input, shape index: {}]   ;;  %s1419_s6 = inlined_call_operand.hbm [shape: f32[4,128], index: 6, kind: output, shape index: {}]  }
   0x1   :  { %v773_v0 = vld [vmem:[%s1413_s0 + $0x80] sm:$0xff]  ;;  %872 = vset.pattern.permute.xlu1 %v899_v2  ;;  %871 = vset.pattern.permute.xlu0 %v899_v2  ;;  %v28_v6 = vld [vmem:[%s1413_s0 + $0x8] sm:$0xff]  ;;  %v431_v10 = vld [vmem:[%s1414_s1 + $0x78] sm:$0xff] }
   0x2   :  { %v27_v1 = vld [vmem:[%s1413_s0] sm:$0xff]  ;;  %150 = vperm.xlu1 %872, %v773_v0   ;;  %471 = vmatprep.subr.mxu0 %v900_v5  ;;  %v766_v9 = vld [vmem:[%s1413_s0 + $0x48] sm:$0xff]  ;;  %v430_v11 = vld [vmem:[%s1414_s1 + $0x70] sm:$0xff] }
   0x3   :  { %36 = vperm.xlu0 %871, %v27_v1   ;;  %v781_v3 = vld [vmem:[%s1413_s0 + $0xc0] sm:$0xff]  ;;  %832 = vmatprep.subr.mxu1 %v900_v5  ;;  %v782_v12 = vld [vmem:[%s1413_s0 + $0xc8] sm:$0xff]  ;;  %v29_v15 = vld [vmem:[%s1413_s0 + $0x10] sm:$0xff] }
   0x4   :  { %v765_v4 = vld [vmem:[%s1413_s0 + $0x40] sm:$0xff]  ;;  %v774_v13 = vld [vmem:[%s1413_s0 + $0x88] sm:$0xff]  ;;  %472 = vmatpush1.msra.mxu0 %v431_v10  ;;  %v427_v18 = vld [vmem:[%s1414_s1 + $0x58] sm:$0xff] }
   0x5   :  { %v789_v7 = vld [vmem:[%s1413_s0 + $0x100] sm:$0xff]  ;;  %473 = vmatprep.subr.mxu0 %v900_v5  ;;  %v429_v14 = vld [vmem:[%s1414_s1 + $0x68] sm:$0xff]  ;;  %v767_v20 = vld [vmem:[%s1413_s0 + $0x50] sm:$0xff] }
   0x6   :  { %215 = vperm.xlu1 %872, %v781_v3   ;;  %v797_v8 = vld [vmem:[%s1413_s0 + $0x140] sm:$0xff]  ;;  %474 = vmatpush1.msra.mxu0 %v430_v11  ;;  %v790_v16 = vld [vmem:[%s1413_s0 + $0x108] sm:$0xff]  ;;  %v426_v21 = vld [vmem:[%s1414_s1 + $0x50] sm:$0xff] }
   0x7   :  { %85 = vperm.xlu0 %871, %v765_v4   ;;  %475 = vmatprep.subr.mxu0 %v900_v5  ;;  %v428_v17 = vld [vmem:[%s1414_s1 + $0x60] sm:$0xff]  ;;  %v798_v19 = vld [vmem:[%s1413_s0 + $0x148] sm:$0xff] }
   0x8   :  { %476 = vmatpush1.msra.mxu0 %v429_v14 }
   0x9   :  { %477 = vmatprep.subr.mxu0 %v900_v5 }
   0xa   :  { %39 = vperm.xlu1 %872, %v28_v6   ;;  %478 = vmatpush1.msra.mxu0 %v428_v17 }
   0xb   :  { %280 = vperm.xlu0 %871, %v789_v7   ;;  %479 = vmatprep.subr.mxu0 %v900_v5 }
   0xc   :  { %480 = vmatpush1.msra.mxu0 %v427_v18 }
   0xe   :  { %345 = vperm.xlu1 %872, %v797_v8  }
   0xf   :  { %88 = vperm.xlu0 %871, %v766_v9  }
  0x12   :  { %218 = vperm.xlu1 %872, %v782_v12  }
  0x13   :  { %153 = vperm.xlu0 %871, %v774_v13  }
  0x16   :  { %42 = vperm.xlu1 %872, %v29_v15  }
  0x17   :  { %283 = vperm.xlu0 %871, %v790_v16  }
  0x1a   :  { %348 = vperm.xlu1 %872, %v798_v19  }
  0x1b   :  { %91 = vperm.xlu0 %871, %v767_v20  }
  0x1c   :  { %11 = vsyncpa [#allocation3], 0  ;;  %v783_v22 = vld [vmem:[%s1413_s0 + $0xd0] sm:$0xff]  ;;  %481 = vmatprep.subr.mxu0 %v900_v5  ;;  %v425_v24 = vld [vmem:[%s1414_s1 + $0x48] sm:$0xff]  ;;  %v24_v17 = vlaneseq  ;;  %s902_s18 = smov [#allocation2]  }
  0x1d   :  { %v775_v23 = vld [vmem:[%s1413_s0 + $0x90] sm:$0xff]  ;;  %482 = vmatpush1.msra.mxu0 %v426_v21  ;;  %v424_v25 = vld [vmem:[%s1414_s1 + $0x40] sm:$0xff]  ;;  %v30_v26 = vld [vmem:[%s1413_s0 + $0x18] sm:$0xff]  ;;  %s757_s19 = sshll.u32 %s902_s18, 4  ;;  %s758_s19 = int_to_ptr.vmem [resolvable:$true] %s757_s19 }
  0x1e   :  { %483 = vmatprep.subr.mxu0 %v900_v5  ;;  %221 = vperm.xlu1 %872, %v783_v22   ;;  %v791_v27 = vld [vmem:[%s1413_s0 + $0x110] sm:$0xff]  ;;  %v423_v28 = vld [vmem:[%s1414_s1 + $0x38] sm:$0xff]  ;;  %v421_v32 = vld [vmem:[%s1414_s1 + $0x28] sm:$0xff]  ;;  %v1203_v18 = vand.u32 127, %v24_v17  ;;  %p882_p1 = scmp.lt.s32.totalorder %s758_s19, %s758_s19 }
  0x1f   :  { %156 = vperm.xlu0 %871, %v775_v23   ;;  %484 = vmatpush1.msra.mxu0 %v425_v24  ;;  %v799_v29 = vld [vmem:[%s1413_s0 + $0x150] sm:$0xff]  ;;  %v768_v30 = vld [vmem:[%s1413_s0 + $0x58] sm:$0xff]  ;;  %v420_v35 = vld [vmem:[%s1414_s1 + $0x20] sm:$0xff] }
  0x20   :  { %485 = vmatprep.subr.mxu0 %v900_v5  ;;  %v422_v31 = vld [vmem:[%s1414_s1 + $0x30] sm:$0xff]  ;;  %v784_v33 = vld [vmem:[%s1413_s0 + $0xd8] sm:$0xff]  ;;  %v31_v36 = vld [vmem:[%s1413_s0 + $0x20] sm:$0xff]  ;;  %v1206_v21 = vadd.s32 128, %v1203_v18 }
  0x21   :  { %486 = vmatpush1.msra.mxu0 %v424_v25  ;;  %v776_v34 = vld [vmem:[%s1413_s0 + $0x98] sm:$0xff]  ;;  %v418_v39 = vld [vmem:[%s1414_s1 + $0x10] sm:$0xff]  ;;  %v769_v41 = vld [vmem:[%s1413_s0 + $0x60] sm:$0xff] }
  0x22   :  { %45 = vperm.xlu1 %872, %v30_v26   ;;  %487 = vmatprep.subr.mxu0 %v900_v5  ;;  %v792_v37 = vld [vmem:[%s1413_s0 + $0x118] sm:$0xff]  ;;  %v417_v42 = vld [vmem:[%s1414_s1 + $0x8] sm:$0xff]  ;;  %v785_v43 = vld [vmem:[%s1413_s0 + $0xe0] sm:$0xff] }
  0x23   :  { %286 = vperm.xlu0 %871, %v791_v27   ;;  %488 = vmatpush1.msra.mxu0 %v423_v28  ;;  %v419_v38 = vld [vmem:[%s1414_s1 + $0x18] sm:$0xff]  ;;  %v777_v44 = vld [vmem:[%s1413_s0 + $0xa0] sm:$0xff]  ;;  %v445_v46 = vld [vmem:[%s1414_s1 + $0xe8] sm:$0xff] }
  0x24   :  { %489 = vmatprep.subr.mxu0 %v900_v5  ;;  %v800_v40 = vld [vmem:[%s1413_s0 + $0x158] sm:$0xff]  ;;  %v416_v45 = vld [vmem:[%s1414_s1] sm:$0xff]  ;;  %v32_v47 = vld [vmem:[%s1413_s0 + $0x28] sm:$0xff] }
  0x25   :  { %490 = vmatpush1.msra.mxu0 %v422_v31  ;;  %v793_v48 = vld [vmem:[%s1413_s0 + $0x120] sm:$0xff]  ;;  %v770_v51 = vld [vmem:[%s1413_s0 + $0x68] sm:$0xff]  ;;  %v443_v52 = vld [vmem:[%s1414_s1 + $0xd8] sm:$0xff] }
  0x26   :  { %351 = vperm.xlu1 %872, %v799_v29   ;;  %491 = vmatprep.subr.mxu0 %v900_v5  ;;  %v444_v49 = vld [vmem:[%s1414_s1 + $0xe0] sm:$0xff]  ;;  %v442_v53 = vld [vmem:[%s1414_s1 + $0xd0] sm:$0xff]  ;;  %v786_v54 = vld [vmem:[%s1413_s0 + $0xe8] sm:$0xff] }
  0x27   :  { %94 = vperm.xlu0 %871, %v768_v30   ;;  %492 = vmatpush1.msra.mxu0 %v421_v32  ;;  %v801_v50 = vld [vmem:[%s1413_s0 + $0x160] sm:$0xff]  ;;  %v778_v55 = vld [vmem:[%s1413_s0 + $0xa8] sm:$0xff]  ;;  %v33_v57 = vld [vmem:[%s1413_s0 + $0x30] sm:$0xff] }
  0x28   :  { %493 = vmatprep.subr.mxu0 %v900_v5  ;;  %v441_v56 = vld [vmem:[%s1414_s1 + $0xc8] sm:$0xff]  ;;  %v440_v59 = vld [vmem:[%s1414_s1 + $0xc0] sm:$0xff]  ;;  %v439_v60 = vld [vmem:[%s1414_s1 + $0xb8] sm:$0xff] }
  0x29   :  { %494 = vmatpush1.msra.mxu0 %v420_v35  ;;  %v794_v58 = vld [vmem:[%s1413_s0 + $0x128] sm:$0xff]  ;;  %v771_v62 = vld [vmem:[%s1413_s0 + $0x70] sm:$0xff]  ;;  %v436_v3 = vld [vmem:[%s1414_s1 + $0xa0] sm:$0xff] }
  0x2a   :  { %224 = vperm.xlu1 %872, %v784_v33   ;;  %495 = vmatprep.subr.mxu0 %v900_v5  ;;  %v802_v61 = vld [vmem:[%s1413_s0 + $0x168] sm:$0xff]  ;;  %v438_v63 = vld [vmem:[%s1414_s1 + $0xb0] sm:$0xff]  ;;  %v34_v4 = vld [vmem:[%s1413_s0 + $0x38] sm:$0xff] }
  0x2b   :  { %159 = vperm.xlu0 %871, %v776_v34   ;;  %496 = vmatpush1.msra.mxu0 %v419_v38  ;;  %v787_v0 = vld [vmem:[%s1413_s0 + $0xf0] sm:$0xff]  ;;  %v437_v2 = vld [vmem:[%s1414_s1 + $0xa8] sm:$0xff]  ;;  %v435_v7 = vld [vmem:[%s1414_s1 + $0x98] sm:$0xff] }
  0x2c   :  { %497 = vmatprep.subr.mxu0 %v900_v5  ;;  %v779_v1 = vld [vmem:[%s1413_s0 + $0xb0] sm:$0xff]  ;;  %v772_v9 = vld [vmem:[%s1413_s0 + $0x78] sm:$0xff]  ;;  %v433_v11 = vld [vmem:[%s1414_s1 + $0x88] sm:$0xff] }
  0x2d   :  { %498 = vmatpush1.msra.mxu0 %v418_v39  ;;  %v795_v6 = vld [vmem:[%s1413_s0 + $0x130] sm:$0xff]  ;;  %v788_v12 = vld [vmem:[%s1413_s0 + $0xf8] sm:$0xff]  ;;  %v432_v14 = vld [vmem:[%s1414_s1 + $0x80] sm:$0xff] }
  0x2e   :  { %48 = vperm.xlu1 %872, %v31_v36   ;;  %499 = vmatprep.subr.mxu0 %v900_v5  ;;  %v803_v8 = vld [vmem:[%s1413_s0 + $0x170] sm:$0xff]  ;;  %v780_v13 = vld [vmem:[%s1413_s0 + $0xb8] sm:$0xff] }
  0x2f   :  { %289 = vperm.xlu0 %871, %v792_v37   ;;  %500 = vmatpush1.msra.mxu0 %v417_v42  ;;  %v434_v10 = vld [vmem:[%s1414_s1 + $0x90] sm:$0xff]  ;;  %v804_v15 = vld [vmem:[%s1413_s0 + $0x178] sm:$0xff] }
  0x30   :  { %501 = vmatprep.subr.mxu0 %v900_v5  ;;  %v796_v16 = vld [vmem:[%s1413_s0 + $0x138] sm:$0xff] }
  0x31   :  { %502 = vmatpush1.msra.mxu0 %v416_v45 }
  0x32   :  { %354 = vperm.xlu1 %872, %v800_v40   ;;  %507 = vmatprep.subr.mxu0 %v900_v5 }
  0x33   :  { %97 = vperm.xlu0 %871, %v769_v41   ;;  %508 = vmatpush2.msra.mxu0 %v445_v46 }
  0x34   :  { %509 = vmatprep.subr.mxu0 %v900_v5 }
  0x35   :  { %510 = vmatpush2.msra.mxu0 %v444_v49 }
  0x36   :  { %227 = vperm.xlu1 %872, %v785_v43   ;;  %511 = vmatprep.subr.mxu0 %v900_v5 }
  0x37   :  { %162 = vperm.xlu0 %871, %v777_v44   ;;  %512 = vmatpush2.msra.mxu0 %v443_v52 }
  0x38   :  { %513 = vmatprep.subr.mxu0 %v900_v5 }
  0x39   :  { %514 = vmatpush2.msra.mxu0 %v442_v53 }
  0x3a   :  { %51 = vperm.xlu1 %872, %v32_v47   ;;  %515 = vmatprep.subr.mxu0 %v900_v5 }
  0x3b   :  { %292 = vperm.xlu0 %871, %v793_v48   ;;  %516 = vmatpush2.msra.mxu0 %v441_v56 }
  0x3c   :  { %517 = vmatprep.subr.mxu0 %v900_v5 }
  0x3d   :  { %518 = vmatpush2.msra.mxu0 %v440_v59 }
  0x3e   :  { %357 = vperm.xlu1 %872, %v801_v50   ;;  %519 = vmatprep.subr.mxu0 %v900_v5 }
  0x3f   :  { %100 = vperm.xlu0 %871, %v770_v51   ;;  %520 = vmatpush2.msra.mxu0 %v439_v60 }
  0x40   :  { %521 = vmatprep.subr.mxu0 %v900_v5 }
  0x41   :  { %522 = vmatpush2.msra.mxu0 %v438_v63 }
  0x42   :  { %230 = vperm.xlu1 %872, %v786_v54   ;;  %523 = vmatprep.subr.mxu0 %v900_v5 }
  0x43   :  { %165 = vperm.xlu0 %871, %v778_v55   ;;  %524 = vmatpush2.msra.mxu0 %v437_v2 }
  0x44   :  { %525 = vmatprep.subr.mxu0 %v900_v5 }
  0x45   :  { %526 = vmatpush2.msra.mxu0 %v436_v3 }
  0x46   :  { %54 = vperm.xlu1 %872, %v33_v57   ;;  %527 = vmatprep.subr.mxu0 %v900_v5 }
  0x47   :  { %295 = vperm.xlu0 %871, %v794_v58   ;;  %528 = vmatpush2.msra.mxu0 %v435_v7 }
  0x48   :  { %529 = vmatprep.subr.mxu0 %v900_v5 }
  0x49   :  { %530 = vmatpush2.msra.mxu0 %v434_v10 }
  0x4a   :  { %360 = vperm.xlu1 %872, %v802_v61   ;;  %531 = vmatprep.subr.mxu0 %v900_v5 }
  0x4b   :  { %103 = vperm.xlu0 %871, %v771_v62   ;;  %532 = vmatpush2.msra.mxu0 %v433_v11 }
  0x4c   :  { %533 = vmatprep.subr.mxu0 %v900_v5 }
  0x4d   :  { %534 = vmatpush2.msra.mxu0 %v432_v14 }
  0x4e   :  { %233 = vperm.xlu1 %872, %v787_v0  }
  0x4f   :  { %168 = vperm.xlu0 %871, %v779_v1  }
  0x52   :  { %57 = vperm.xlu1 %872, %v34_v4  }
  0x53   :  { %298 = vperm.xlu0 %871, %v795_v6  }
  0x56   :  { %363 = vperm.xlu1 %872, %v803_v8  }
  0x57   :  { %106 = vperm.xlu0 %871, %v772_v9  }
  0x5a   :  { %236 = vperm.xlu1 %872, %v788_v12  }
  0x5b   :  { %171 = vperm.xlu0 %871, %v780_v13  }
  0x5e   :  { %366 = vperm.xlu1 %872, %v804_v15  }
  0x5f   :  { %301 = vperm.xlu0 %871, %v796_v16  }
  0x7d   :  { %v151_v19 = vpop.permute.xlu1 %150 }
  0x7e   :  { %v37_v20 = vpop.permute.xlu0 %36  ;;  %vm173_vm5 = vcmp.eq.s32.totalorder %v1203_v18, %v151_v19  ;;  %vm174_vm7 = vcmp.eq.s32.totalorder %v1206_v21, %v151_v19 }
  0x7f   :  { %vm59_vm0 = vcmp.eq.s32.totalorder %v1203_v18, %v37_v20  ;;  %vm60_vm3 = vcmp.eq.s32.totalorder %v1206_v21, %v37_v20 }
  0x81   :  { %v216_v22 = vpop.permute.xlu1 %215 }
  0x82   :  { %v86_v23 = vpop.permute.xlu0 %85  ;;  %vm238_vm10 = vcmp.eq.s32.totalorder %v1203_v18, %v216_v22  ;;  %vm239_vm11 = vcmp.eq.s32.totalorder %v1206_v21, %v216_v22 }
  0x83   :  { %vm108_vm1 = vcmp.eq.s32.totalorder %v1203_v18, %v86_v23  ;;  %vm109_vm2 = vcmp.eq.s32.totalorder %v1206_v21, %v86_v23 }
  0x84   :  { %vm124_vm4 = vmor %vm59_vm0, %vm108_vm1 }
  0x85   :  { %vm125_vm6 = vmor %vm60_vm3, %vm109_vm2  ;;  %v40_v24 = vpop.permute.xlu1 %39 }
  0x86   :  { %vm189_vm8 = vmor %vm124_vm4, %vm173_vm5  ;;  %v281_v25 = vpop.permute.xlu0 %280  ;;  %vm1420_vm5 = vcmask 916480  }
  0x87   :  { %vm190_vm9 = vmor %vm125_vm6, %vm174_vm7  ;;  %vm303_vm13 = vcmp.eq.s32.totalorder %v1203_v18, %v281_v25  ;;  %vm304_vm14 = vcmp.eq.s32.totalorder %v1206_v21, %v281_v25  ;;  %v641_v25 = vld [vmem:[%s1417_s4 + $0x60] sm:$0xff] }
  0x88   :  { %vm254_vm12 = vmor %vm189_vm8, %vm238_vm10 }
  0x89   :  { %v346_v26 = vpop.permute.xlu1 %345  ;;  %vm255_vm15 = vmor %vm190_vm9, %vm239_vm11  ;;  %vm62_vm9 = vcmp.eq.s32.totalorder %v1206_v21, %v40_v24 }
  0x8a   :  { %v89_v27 = vpop.permute.xlu0 %88  ;;  %vm369_vm0 = vcmp.eq.s32.totalorder %v1206_v21, %v346_v26  ;;  %vm319_vm1 = vmor %vm254_vm12, %vm303_vm13  ;;  %vm368_vm2 = vcmp.eq.s32.totalorder %v1203_v18, %v346_v26  ;;  %vm61_vm13 = vcmp.eq.s32.totalorder %v1203_v18, %v40_v24  ;;  %v644_v24 = vld [vmem:[%s1417_s4 + $0x78] sm:$0xff] }
  0x8b   :  { %vm320_vm3 = vmor %vm255_vm15, %vm304_vm14  ;;  %vm111_vm6 = vcmp.eq.s32.totalorder %v1206_v21, %v89_v27  ;;  %vm110_vm10 = vcmp.eq.s32.totalorder %v1203_v18, %v89_v27  ;;  %833 = vmatpush3.msra.mxu1 %v644_v24  ;;  %v640_v26 = vld [vmem:[%s1417_s4 + $0x58] sm:$0xff]  ;;  %v639_v27 = vld [vmem:[%s1417_s4 + $0x50] sm:$0xff] }
  0x8c   :  { %vm385_vm4 = vmor %vm320_vm3, %vm369_vm0  ;;  %834 = vmatprep.subr.mxu1 %v900_v5 }
  0x8d   :  { %v219_v28 = vpop.permute.xlu1 %218  ;;  %vm384_vm7 = vmor %vm319_vm1, %vm368_vm2  ;;  %v401_v30 = vsel %vm385_vm4, 1.0, %v900_v5 }
  0x8e   :  { %v154_v29 = vpop.permute.xlu0 %153  ;;  %v400_v31 = vsel %vm384_vm7, 1.0, %v900_v5  ;;  %805 = vmatprep.mubr.msk.f32.mxu0 %vm1420_vm5, %v401_v30  ;;  %vm127_vm11 = vmor %vm62_vm9, %vm111_vm6  ;;  %vm241_vm14 = vcmp.eq.s32.totalorder %v1206_v21, %v219_v28  ;;  %vm240_vm3 = vcmp.eq.s32.totalorder %v1203_v18, %v219_v28  ;;  %v638_v28 = vld [vmem:[%s1417_s4 + $0x48] sm:$0xff]  ;;  %v636_v30 = vld [vmem:[%s1417_s4 + $0x38] sm:$0xff] }
  0x8f   :  { %vm176_vm8 = vcmp.eq.s32.totalorder %v1206_v21, %v154_v29  ;;  %vm175_vm12 = vcmp.eq.s32.totalorder %v1203_v18, %v154_v29  ;;  %536 = vmatmul.mubr.f32.vlgmr.msra.gmra.mxu0 %v400_v31  ;;  %vm126_vm0 = vmor %vm61_vm13, %vm110_vm10  ;;  %v637_v29 = vld [vmem:[%s1417_s4 + $0x40] sm:$0xff]  ;;  %v635_v31 = vld [vmem:[%s1417_s4 + $0x30] sm:$0xff] }
  0x90   :  { %vm192_vm15 = vmor %vm127_vm11, %vm176_vm8 }
  0x91   :  { %v43_v32 = vpop.permute.xlu1 %42  ;;  %vm191_vm2 = vmor %vm126_vm0, %vm175_vm12  ;;  %vm1421_vm12 = vcmask 916480  }
  0x92   :  { %v284_v33 = vpop.permute.xlu0 %283  ;;  %vm257_vm4 = vmor %vm192_vm15, %vm241_vm14  ;;  %vm64_vm0 = vcmp.eq.s32.totalorder %v1206_v21, %v43_v32 }
  0x93   :  { %vm306_vm1 = vcmp.eq.s32.totalorder %v1206_v21, %v284_v33  ;;  %vm305_vm6 = vcmp.eq.s32.totalorder %v1203_v18, %v284_v33  ;;  %vm256_vm11 = vmor %vm191_vm2, %vm240_vm3  ;;  %v633_v33 = vld [vmem:[%s1417_s4 + $0x20] sm:$0xff] }
  0x94   :  { %vm322_vm7 = vmor %vm257_vm4, %vm306_vm1  ;;  %vm63_vm4 = vcmp.eq.s32.totalorder %v1203_v18, %v43_v32  ;;  %v634_v32 = vld [vmem:[%s1417_s4 + $0x28] sm:$0xff] }
  0x95   :  { %v349_v34 = vpop.permute.xlu1 %348  ;;  %vm321_vm10 = vmor %vm256_vm11, %vm305_vm6 }
  0x96   :  { %v92_v35 = vpop.permute.xlu0 %91  ;;  %vm371_vm9 = vcmp.eq.s32.totalorder %v1206_v21, %v349_v34  ;;  %vm370_vm5 = vcmp.eq.s32.totalorder %v1203_v18, %v349_v34  ;;  %v632_v34 = vld [vmem:[%s1417_s4 + $0x18] sm:$0xff] }
  0x97   :  { %vm387_vm8 = vmor %vm322_vm7, %vm371_vm9  ;;  %vm113_vm13 = vcmp.eq.s32.totalorder %v1206_v21, %v92_v35  ;;  %vm112_vm1 = vcmp.eq.s32.totalorder %v1203_v18, %v92_v35  ;;  %v631_v35 = vld [vmem:[%s1417_s4 + $0x10] sm:$0xff] }
  0x98   :  { %v403_v36 = vsel %vm387_vm8, 1.0, %v900_v5  ;;  %vm386_vm14 = vmor %vm321_vm10, %vm370_vm5 }
  0x99   :  { %v222_v37 = vpop.permute.xlu1 %221  ;;  %806 = vmatprep.mubr.msk.f32.mxu0 %vm1421_vm12, %v403_v36  ;;  %v402_v39 = vsel %vm386_vm14, 1.0, %v900_v5  ;;  %vm129_vm2 = vmor %vm64_vm0, %vm113_vm13  ;;  %v630_v36 = vld [vmem:[%s1417_s4 + $0x8] sm:$0xff] }
  0x9a   :  { %v157_v38 = vpop.permute.xlu0 %156  ;;  %541 = vmatmul.mubr.f32.gmra.mxu0 %v402_v39  ;;  %vm243_vm6 = vcmp.eq.s32.totalorder %v1206_v21, %v222_v37  ;;  %vm128_vm5 = vmor %vm63_vm4, %vm112_vm1  ;;  %vm242_vm11 = vcmp.eq.s32.totalorder %v1203_v18, %v222_v37  ;;  %v629_v37 = vld [vmem:[%s1417_s4] sm:$0xff] }
  0x9b   :  { %vm178_vm15 = vcmp.eq.s32.totalorder %v1206_v21, %v157_v38  ;;  %vm177_vm3 = vcmp.eq.s32.totalorder %v1203_v18, %v157_v38 }
  0x9c   :  { %vm194_vm7 = vmor %vm129_vm2, %vm178_vm15 }
  0x9d   :  { %v46_v40 = vpop.permute.xlu1 %45  ;;  %vm193_vm8 = vmor %vm128_vm5, %vm177_vm3  ;;  %vm1422_vm3 = vcmask 916480  }
  0x9e   :  { %v287_v41 = vpop.permute.xlu0 %286  ;;  %vm259_vm10 = vmor %vm194_vm7, %vm243_vm6  ;;  %vm66_vm5 = vcmp.eq.s32.totalorder %v1206_v21, %v46_v40 }
  0x9f   :  { %vm308_vm9 = vcmp.eq.s32.totalorder %v1206_v21, %v287_v41  ;;  %vm307_vm12 = vcmp.eq.s32.totalorder %v1203_v18, %v287_v41  ;;  %vm258_vm15 = vmor %vm193_vm8, %vm242_vm11  ;;  %v577_v41 = vld [vmem:[%s1416_s3 + $0x8] sm:$0xff] }
  0xa0   :  { %vm324_vm13 = vmor %vm259_vm10, %vm308_vm9  ;;  %vm65_vm10 = vcmp.eq.s32.totalorder %v1203_v18, %v46_v40  ;;  %v576_v40 = vld [vmem:[%s1416_s3] sm:$0xff] }
  0xa1   :  { %v352_v42 = vpop.permute.xlu1 %351  ;;  %vm323_vm1 = vmor %vm258_vm15, %vm307_vm12 }
  0xa2   :  { %v95_v43 = vpop.permute.xlu0 %94  ;;  %vm373_vm14 = vcmp.eq.s32.totalorder %v1206_v21, %v352_v42  ;;  %vm372_vm0 = vcmp.eq.s32.totalorder %v1203_v18, %v352_v42 }
  0xa3   :  { %vm389_vm2 = vmor %vm324_vm13, %vm373_vm14  ;;  %vm115_vm4 = vcmp.eq.s32.totalorder %v1206_v21, %v95_v43  ;;  %vm114_vm9 = vcmp.eq.s32.totalorder %v1203_v18, %v95_v43 }
  0xa4   :  { %v405_v44 = vsel %vm389_vm2, 1.0, %v900_v5  ;;  %vm388_vm6 = vmor %vm323_vm1, %vm372_vm0 }
  0xa5   :  { %v225_v45 = vpop.permute.xlu1 %224  ;;  %807 = vmatprep.mubr.msk.f32.mxu0 %vm1422_vm3, %v405_v44  ;;  %v404_v47 = vsel %vm388_vm6, 1.0, %v900_v5  ;;  %vm131_vm8 = vmor %vm66_vm5, %vm115_vm4 }
  0xa6   :  { %v160_v46 = vpop.permute.xlu0 %159  ;;  %546 = vmatmul.mubr.f32.gmra.mxu0 %v404_v47  ;;  %vm245_vm12 = vcmp.eq.s32.totalorder %v1206_v21, %v225_v45  ;;  %vm130_vm14 = vmor %vm65_vm10, %vm114_vm9  ;;  %vm244_vm15 = vcmp.eq.s32.totalorder %v1203_v18, %v225_v45 }
  0xa7   :  { %vm180_vm7 = vcmp.eq.s32.totalorder %v1206_v21, %v160_v46  ;;  %vm179_vm11 = vcmp.eq.s32.totalorder %v1203_v18, %v160_v46 }
  0xa8   :  { %vm196_vm13 = vmor %vm131_vm8, %vm180_vm7 }
  0xa9   :  { %v49_v48 = vpop.permute.xlu1 %48  ;;  %vm195_vm2 = vmor %vm130_vm14, %vm179_vm11  ;;  %vm1423_vm11 = vcmask 916480  }
  0xaa   :  { %v290_v49 = vpop.permute.xlu0 %289  ;;  %vm261_vm1 = vmor %vm196_vm13, %vm245_vm12  ;;  %vm68_vm14 = vcmp.eq.s32.totalorder %v1206_v21, %v49_v48 }
  0xab   :  { %vm310_vm0 = vcmp.eq.s32.totalorder %v1206_v21, %v290_v49  ;;  %vm309_vm3 = vcmp.eq.s32.totalorder %v1203_v18, %v290_v49  ;;  %vm260_vm8 = vmor %vm195_vm2, %vm244_vm15 }
  0xac   :  { %vm326_vm4 = vmor %vm261_vm1, %vm310_vm0  ;;  %vm67_vm1 = vcmp.eq.s32.totalorder %v1203_v18, %v49_v48 }
  0xad   :  { %v355_v50 = vpop.permute.xlu1 %354  ;;  %vm325_vm9 = vmor %vm260_vm8, %vm309_vm3 }
  0xae   :  { %v98_v51 = vpop.permute.xlu0 %97  ;;  %vm375_vm6 = vcmp.eq.s32.totalorder %v1206_v21, %v355_v50  ;;  %vm374_vm5 = vcmp.eq.s32.totalorder %v1203_v18, %v355_v50 }
  0xaf   :  { %vm391_vm7 = vmor %vm326_vm4, %vm375_vm6  ;;  %vm117_vm10 = vcmp.eq.s32.totalorder %v1206_v21, %v98_v51  ;;  %vm116_vm0 = vcmp.eq.s32.totalorder %v1203_v18, %v98_v51 }
  0xb0   :  { %v407_v52 = vsel %vm391_vm7, 1.0, %v900_v5  ;;  %vm390_vm12 = vmor %vm325_vm9, %vm374_vm5 }
  0xb1   :  { %v228_v53 = vpop.permute.xlu1 %227  ;;  %808 = vmatprep.mubr.msk.f32.mxu0 %vm1423_vm11, %v407_v52  ;;  %v406_v55 = vsel %vm390_vm12, 1.0, %v900_v5  ;;  %vm133_vm2 = vmor %vm68_vm14, %vm117_vm10 }
  0xb2   :  { %v163_v54 = vpop.permute.xlu0 %162  ;;  %551 = vmatmul.mubr.f32.gmra.mxu0 %v406_v55  ;;  %vm247_vm3 = vcmp.eq.s32.totalorder %v1206_v21, %v228_v53  ;;  %vm132_vm6 = vmor %vm67_vm1, %vm116_vm0  ;;  %vm246_vm8 = vcmp.eq.s32.totalorder %v1203_v18, %v228_v53 }
  0xb3   :  { %vm182_vm13 = vcmp.eq.s32.totalorder %v1206_v21, %v163_v54  ;;  %vm181_vm15 = vcmp.eq.s32.totalorder %v1203_v18, %v163_v54 }
  0xb4   :  { %vm198_vm4 = vmor %vm133_vm2, %vm182_vm13 }
  0xb5   :  { %v52_v56 = vpop.permute.xlu1 %51  ;;  %vm197_vm7 = vmor %vm132_vm6, %vm181_vm15 }
  0xb6   :  { %v293_v57 = vpop.permute.xlu0 %292  ;;  %vm263_vm9 = vmor %vm198_vm4, %vm247_vm3  ;;  %vm1424_vm3 = vcmask 916480   ;;  %vm69_vm4 = vcmp.eq.s32.totalorder %v1203_v18, %v52_v56 }
  0xb7   :  { %vm312_vm5 = vcmp.eq.s32.totalorder %v1206_v21, %v293_v57  ;;  %vm311_vm11 = vcmp.eq.s32.totalorder %v1203_v18, %v293_v57  ;;  %vm262_vm13 = vmor %vm197_vm7, %vm246_vm8 }
  0xb8   :  { %vm328_vm10 = vmor %vm263_vm9, %vm312_vm5  ;;  %vm70_vm9 = vcmp.eq.s32.totalorder %v1206_v21, %v52_v56 }
  0xb9   :  { %v358_v58 = vpop.permute.xlu1 %357  ;;  %vm327_vm1 = vmor %vm262_vm13, %vm311_vm11 }
  0xba   :  { %v101_v59 = vpop.permute.xlu0 %100  ;;  %vm377_vm12 = vcmp.eq.s32.totalorder %v1206_v21, %v358_v58  ;;  %vm376_vm14 = vcmp.eq.s32.totalorder %v1203_v18, %v358_v58 }
  0xbb   :  { %vm393_vm2 = vmor %vm328_vm10, %vm377_vm12  ;;  %vm118_vm0 = vcmp.eq.s32.totalorder %v1203_v18, %v101_v59  ;;  %vm119_vm15 = vcmp.eq.s32.totalorder %v1206_v21, %v101_v59 }
  0xbc   :  { %v409_v60 = vsel %vm393_vm2, 1.0, %v900_v5  ;;  %vm392_vm5 = vmor %vm327_vm1, %vm376_vm14 }
  0xbd   :  { %v231_v61 = vpop.permute.xlu1 %230  ;;  %809 = vmatprep.mubr.msk.f32.mxu0 %vm1424_vm3, %v409_v60  ;;  %vm134_vm10 = vmor %vm69_vm4, %vm118_vm0  ;;  %v408_v63 = vsel %vm392_vm5, 1.0, %v900_v5 }
  0xbe   :  { %v166_v62 = vpop.permute.xlu0 %165  ;;  %vm135_vm8 = vmor %vm70_vm9, %vm119_vm15  ;;  %556 = vmatmul.mubr.f32.gmra.mxu0 %v408_v63  ;;  %vm248_vm11 = vcmp.eq.s32.totalorder %v1203_v18, %v231_v61  ;;  %vm249_vm2 = vcmp.eq.s32.totalorder %v1206_v21, %v231_v61 }
  0xbf   :  { %vm183_vm6 = vcmp.eq.s32.totalorder %v1203_v18, %v166_v62  ;;  %vm184_vm7 = vcmp.eq.s32.totalorder %v1206_v21, %v166_v62 }
  0xc0   :  { %vm199_vm12 = vmor %vm134_vm10, %vm183_vm6 }
  0xc1   :  { %v55_v0 = vpop.permute.xlu1 %54  ;;  %vm200_vm13 = vmor %vm135_vm8, %vm184_vm7 }
  0xc2   :  { %v296_v1 = vpop.permute.xlu0 %295  ;;  %vm264_vm14 = vmor %vm199_vm12, %vm248_vm11  ;;  %vm71_vm10 = vcmp.eq.s32.totalorder %v1203_v18, %v55_v0  ;;  %vm1425_vm12 = vcmask 916480  }
  0xc3   :  { %vm314_vm3 = vcmp.eq.s32.totalorder %v1206_v21, %v296_v1  ;;  %vm265_vm1 = vmor %vm200_vm13, %vm249_vm2  ;;  %vm313_vm0 = vcmp.eq.s32.totalorder %v1203_v18, %v296_v1  ;;  %vm72_vm2 = vcmp.eq.s32.totalorder %v1206_v21, %v55_v0 }
  0xc4   :  { %vm330_vm4 = vmor %vm265_vm1, %vm314_vm3 }
  0xc5   :  { %v361_v2 = vpop.permute.xlu1 %360  ;;  %vm329_vm7 = vmor %vm264_vm14, %vm313_vm0 }
  0xc6   :  { %v104_v3 = vpop.permute.xlu0 %103  ;;  %vm379_vm15 = vcmp.eq.s32.totalorder %v1206_v21, %v361_v2  ;;  %vm378_vm6 = vcmp.eq.s32.totalorder %v1203_v18, %v361_v2 }
  0xc7   :  { %vm120_vm5 = vcmp.eq.s32.totalorder %v1203_v18, %v104_v3  ;;  %vm395_vm9 = vmor %vm330_vm4, %vm379_vm15  ;;  %vm121_vm8 = vcmp.eq.s32.totalorder %v1206_v21, %v104_v3 }
  0xc8   :  { %v411_v4 = vsel %vm395_vm9, 1.0, %v900_v5  ;;  %vm136_vm11 = vmor %vm71_vm10, %vm120_vm5 }
  0xc9   :  { %v234_v6 = vpop.permute.xlu1 %233  ;;  %810 = vmatprep.mubr.msk.f32.mxu0 %vm1425_vm12, %v411_v4  ;;  %vm394_vm1 = vmor %vm329_vm7, %vm378_vm6 }
  0xca   :  { %v169_v7 = vpop.permute.xlu0 %168  ;;  %vm137_vm4 = vmor %vm72_vm2, %vm121_vm8  ;;  %v410_v8 = vsel %vm394_vm1, 1.0, %v900_v5  ;;  %vm250_vm14 = vcmp.eq.s32.totalorder %v1203_v18, %v234_v6  ;;  %vm251_vm15 = vcmp.eq.s32.totalorder %v1206_v21, %v234_v6 }
  0xcb   :  { %vm185_vm13 = vcmp.eq.s32.totalorder %v1203_v18, %v169_v7  ;;  %vm186_vm3 = vcmp.eq.s32.totalorder %v1206_v21, %v169_v7  ;;  %561 = vmatmul.mubr.f32.gmra.mxu0 %v410_v8 }
  0xcc   :  { %vm201_vm0 = vmor %vm136_vm11, %vm185_vm13 }
  0xcd   :  { %vm202_vm5 = vmor %vm137_vm4, %vm186_vm3  ;;  %v58_v9 = vpop.permute.xlu1 %57 }
  0xce   :  { %v299_v10 = vpop.permute.xlu0 %298  ;;  %vm266_vm10 = vmor %vm201_vm0, %vm250_vm14  ;;  %vm73_vm3 = vcmp.eq.s32.totalorder %v1203_v18, %v58_v9  ;;  %vm74_vm14 = vcmp.eq.s32.totalorder %v1206_v21, %v58_v9 }
  0xcf   :  { %vm315_vm9 = vcmp.eq.s32.totalorder %v1203_v18, %v299_v10  ;;  %vm316_vm12 = vcmp.eq.s32.totalorder %v1206_v21, %v299_v10  ;;  %vm267_vm6 = vmor %vm202_vm5, %vm251_vm15  ;;  %vm1428_vm5 = vcmask 916480  }
  0xd0   :  { %vm1308_vm7 = vmor %vm266_vm10, %vm315_vm9 }
  0xd1   :  { %v364_v12 = vpop.permute.xlu1 %363  ;;  %vm332_vm8 = vmor %vm267_vm6, %vm316_vm12 }
  0xd2   :  { %v107_v13 = vpop.permute.xlu0 %106  ;;  %vm381_vm11 = vcmp.eq.s32.totalorder %v1206_v21, %v364_v12  ;;  %vm380_vm1 = vcmp.eq.s32.totalorder %v1203_v18, %v364_v12 }
  0xd3   :  { %vm122_vm2 = vcmp.eq.s32.totalorder %v1203_v18, %v107_v13  ;;  %vm123_vm13 = vcmp.eq.s32.totalorder %v1206_v21, %v107_v13  ;;  %vm397_vm4 = vmor %vm332_vm8, %vm381_vm11 }
  0xd4   :  { %vm138_vm0 = vmor %vm73_vm3, %vm122_vm2  ;;  %v413_v14 = vsel %vm397_vm4, 1.0, %v900_v5 }
  0xd5   :  { %vm139_vm15 = vmor %vm74_vm14, %vm123_vm13  ;;  %v237_v15 = vpop.permute.xlu1 %236  ;;  %811 = vmatprep.mubr.msk.f32.mxu0 %vm1428_vm5, %v413_v14 }
  0xd6   :  { %v172_v16 = vpop.permute.xlu0 %171  ;;  %vm252_vm9 = vcmp.eq.s32.totalorder %v1203_v18, %v237_v15  ;;  %vm396_vm6 = vmor %vm1308_vm7, %vm380_vm1  ;;  %vm253_vm8 = vcmp.eq.s32.totalorder %v1206_v21, %v237_v15 }
  0xd7   :  { %vm187_vm10 = vcmp.eq.s32.totalorder %v1203_v18, %v172_v16  ;;  %vm188_vm12 = vcmp.eq.s32.totalorder %v1206_v21, %v172_v16  ;;  %v412_v17 = vsel %vm396_vm6, 1.0, %v900_v5 }
  0xd8   :  { %vm203_vm11 = vmor %vm138_vm0, %vm187_vm10  ;;  %566 = vmatmul.mubr.f32.gmra.mxu0 %v412_v17 }
  0xd9   :  { %vm204_vm2 = vmor %vm139_vm15, %vm188_vm12  ;;  %v367_v19 = vpop.permute.xlu1 %366  ;;  %vm1429_vm15 = vcmask 916480   ;;  %vm657_vm12 = vcmask 1041409  }
  0xda   :  { %v302_v20 = vpop.permute.xlu0 %301  ;;  %vm268_vm13 = vmor %vm203_vm11, %vm252_vm9  ;;  %vm383_vm3 = vcmp.eq.s32.totalorder %v1206_v21, %v367_v19  ;;  %vm382_vm1 = vcmp.eq.s32.totalorder %v1203_v18, %v367_v19  ;;  %vm901_vm9 = vmmov 0   ;;  %vm663_vm11 = vcmask 1043459  }
  0xdb   :  { %vm269_vm4 = vmor %vm204_vm2, %vm253_vm8  ;;  %vm317_vm14 = vcmp.eq.s32.totalorder %v1203_v18, %v302_v20  ;;  %vm318_vm5 = vcmp.eq.s32.totalorder %v1206_v21, %v302_v20  ;;  %v643_v21 = vld [vmem:[%s1417_s4 + $0x70] sm:$0xff]  ;;  %v642_v18 = vld [vmem:[%s1417_s4 + $0x68] sm:$0xff]  ;;  %864 = vmatprep.mubr.msk.f32.mxu1 %vm901_vm9, %v900_v5  ;;  %vm660_vm8 = vcmask 1042434   ;;  %vm736_vm2 = vcmask 1043456  }
  0xdc   :  { %vm333_vm7 = vmor %vm268_vm13, %vm317_vm14  ;;  %835 = vmatpush3.msra.mxu1 %v643_v21  ;;  %v813_v21 = vld [vmem:[%s1415_s2] ss:$0 sm:$0xff] }
  0xdd   :  { %vm334_vm0 = vmor %vm269_vm4, %vm318_vm5  ;;  %836 = vmatprep.subr.mxu1 %v900_v5 }
  0xde   :  { %vm399_vm10 = vmor %vm334_vm0, %vm383_vm3  ;;  %837 = vmatpush3.msra.mxu1 %v642_v18 }
  0xdf   :  { %v415_v22 = vsel %vm399_vm10, 1.0, %v900_v5  ;;  %vm398_vm6 = vmor %vm333_vm7, %vm382_vm1  ;;  %838 = vmatprep.subr.mxu1 %v900_v5 }
  0xe0   :  { %812 = vmatprep.mubr.msk.f32.mxu0 %vm1429_vm15, %v415_v22  ;;  %v414_v23 = vsel %vm398_vm6, 1.0, %v900_v5  ;;  %839 = vmatpush3.msra.mxu1 %v641_v25 }
  0xe1   :  { %571 = vmatmul.mubr.f32.gmra.mxu0 %v414_v23  ;;  %840 = vmatprep.subr.mxu1 %v900_v5 }
  0xe2   :  { %841 = vmatpush3.msra.mxu1 %v640_v26 }
  0xe3   :  { %842 = vmatprep.subr.mxu1 %v900_v5 }
  0xe4   :  { %843 = vmatpush3.msra.mxu1 %v639_v27 }
  0xe5   :  { %844 = vmatprep.subr.mxu1 %v900_v5 }
  0xe6   :  { %845 = vmatpush3.msra.mxu1 %v638_v28 }
  0xe7   :  { %846 = vmatprep.subr.mxu1 %v900_v5 }
  0xe8   :  { %847 = vmatpush3.msra.mxu1 %v637_v29 }
  0xe9   :  { %848 = vmatprep.subr.mxu1 %v900_v5 }
  0xea   :  { %849 = vmatpush3.msra.mxu1 %v636_v30 }
  0xeb   :  { %850 = vmatprep.subr.mxu1 %v900_v5 }
  0xec   :  { %851 = vmatpush3.msra.mxu1 %v635_v31 }
  0xed   :  { %852 = vmatprep.subr.mxu1 %v900_v5 }
  0xee   :  { %853 = vmatpush3.msra.mxu1 %v634_v32 }
  0xef   :  { %854 = vmatprep.subr.mxu1 %v900_v5 }
  0xf0   :  { %855 = vmatpush3.msra.mxu1 %v633_v33 }
  0xf1   :  { %856 = vmatprep.subr.mxu1 %v900_v5 }
  0xf2   :  { %857 = vmatpush3.msra.mxu1 %v632_v34 }
  0xf3   :  { %858 = vmatprep.subr.mxu1 %v900_v5 }
  0xf4   :  { %859 = vmatpush3.msra.mxu1 %v631_v35 }
  0xf5   :  { %860 = vmatprep.subr.mxu1 %v900_v5 }
  0xf6   :  { %861 = vmatpush3.msra.mxu1 %v630_v36 }
  0xf7   :  { %862 = vmatprep.subr.mxu1 %v900_v5 }
  0xf8   :  { %863 = vmatpush3.msra.mxu1 %v629_v37 }
 0x14f   :  { %v537_v38 = vpop.f32.mrf.mxu0 }
 0x150   :  { %v578_v43 = vadd.f32 %v576_v40, %v537_v38 }
 0x151   :  { %v539_v39 = vpop.f32.mrf.mxu0 }
 0x15a   :  { %v542_v42 = vpop.f32.mrf.mxu0 }
 0x15b   :  { %v579_v44 = vadd.f32 %v577_v41, %v542_v42 }
 0x15c   :  { %v544_v45 = vpop.f32.mrf.mxu0 }
 0x15d   :  { %v586_v46 = vmax.f32 %v578_v43, %v579_v44  ;;  %v814_v43 = vld [vmem:[%s1418_s5] ss:$0 sm:$0xff]  ;;  %s877_s5 = scalar_lea.vmem %s758_s19, 64 }
 0x15e   :  { %p878_p0 = scmp.ne.s32.totalorder %s758_s19, %s877_s5  ;;  %p883_p2 = scmp.lt.s32.totalorder %s877_s5, %s877_s5 }
 0x15f   :  { %v587_v0 = vrot.slane %v586_v46, 4 }
 0x160   :  { %p884_p3 = por %p883_p2, %p882_p1 }
 0x161   :  { %v588_v6 = vmax.f32 %v586_v46, %v587_v0 }
 0x162   :  { %p885_p4 = pnand %p884_p3, %p878_p0 }
 0x163   :  { %v589_v9 = vrot.slane %v588_v6, 2 }
 0x165   :  { %v590_v16 = vmax.f32 %v588_v6, %v589_v9 }
 0x166   :  { %v547_v47 = vpop.f32.mrf.mxu0 }
 0x167   :  { %v580_v53 = vadd.f32 %v576_v40, %v547_v47  ;;  %v591_v23 = vrot.slane %v590_v16, 1 }
 0x168   :  { %v549_v48 = vpop.f32.mrf.mxu0 }
 0x169   :  { %v592_v27 = vmax.f32 %v590_v16, %v591_v23 }
 0x16b   :  { %v621_v32 = vadd.f32 %v813_v21, %v592_v27 }
 0x16d   :  { %v625_v37 = vmax.f32 %v621_v32, 0.0 }
 0x172   :  { %v552_v49 = vpop.f32.mrf.mxu0 }
 0x173   :  { %v581_v52 = vadd.f32 %v577_v41, %v552_v49 }
 0x174   :  { %v554_v5 = vpop.f32.mrf.mxu0 }
 0x175   :  { %v593_v55 = vmax.f32 %v580_v53, %v581_v52 }
 0x177   :  { %v594_v60 = vrot.slane %v593_v55, 4 }
 0x179   :  { %v595_v62 = vmax.f32 %v593_v55, %v594_v60 }
 0x17b   :  { %v596_v2 = vrot.slane %v595_v62, 2 }
 0x17d   :  { %v597_v7 = vmax.f32 %v595_v62, %v596_v2 }
 0x17e   :  { %v557_v50 = vpop.f32.mrf.mxu0 }
 0x17f   :  { %v582_v56 = vadd.f32 %v576_v40, %v557_v50  ;;  %v598_v11 = vrot.slane %v597_v7, 1 }
 0x180   :  { %v559_v51 = vpop.f32.mrf.mxu0 }
 0x181   :  { %v599_v19 = vmax.f32 %v597_v7, %v598_v11 }
 0x183   :  { %v622_v18 = vadd.f32 %v813_v21, %v599_v19 }
 0x185   :  { %v626_v29 = vmax.f32 %v622_v18, 0.0 }
 0x187   :  { %v656_v35 = vrot.slane %v626_v29, 7 }
 0x189   :  { %v658_v39 = vsel %vm657_vm12, %v656_v35, %v625_v37 }
 0x18b   :  { %v562_v54 = vpop.f32.mrf.mxu0 }
 0x18c   :  { %v583_v57 = vadd.f32 %v577_v41, %v562_v54 }
 0x18d   :  { %v564_v58 = vpop.f32.mrf.mxu0 }
 0x18e   :  { %v600_v59 = vmax.f32 %v582_v56, %v583_v57 }
 0x190   :  { %v601_v61 = vrot.slane %v600_v59, 4 }
 0x192   :  { %v602_v63 = vmax.f32 %v600_v59, %v601_v61 }
 0x194   :  { %v603_v3 = vrot.slane %v602_v63, 2 }
 0x196   :  { %v604_v8 = vmax.f32 %v602_v63, %v603_v3 }
 0x198   :  { %v567_v1 = vpop.f32.mrf.mxu0  ;;  %v605_v14 = vrot.slane %v604_v8, 1 }
 0x199   :  { %v584_v12 = vadd.f32 %v576_v40, %v567_v1 }
 0x19a   :  { %v569_v4 = vpop.f32.mrf.mxu0  ;;  %v606_v22 = vmax.f32 %v604_v8, %v605_v14 }
 0x19c   :  { %v623_v26 = vadd.f32 %v813_v21, %v606_v22 }
 0x19e   :  { %v627_v31 = vmax.f32 %v623_v26, 0.0 }
 0x1a0   :  { %v659_v36 = vrot.slane %v627_v31, 6 }
 0x1a1   :  { %v572_v10 = vpop.f32.mrf.mxu0 }
 0x1a2   :  { %v585_v13 = vadd.f32 %v577_v41, %v572_v10  ;;  %v661_v41 = vsel %vm660_vm8, %v659_v36, %v658_v39 }
 0x1a3   :  { %v574_v15 = vpop.f32.mrf.mxu0 }
 0x1a4   :  { %v607_v17 = vmax.f32 %v584_v12, %v585_v13 }
 0x1a6   :  { %v608_v20 = vrot.slane %v607_v17, 4 }
 0x1a8   :  { %v609_v24 = vmax.f32 %v607_v17, %v608_v20 }
 0x1aa   :  { %v610_v25 = vrot.slane %v609_v24, 2 }
 0x1ac   :  { %v611_v28 = vmax.f32 %v609_v24, %v610_v25 }
 0x1ae   :  { %v612_v30 = vrot.slane %v611_v28, 1 }
 0x1b0   :  { %v613_v33 = vmax.f32 %v611_v28, %v612_v30 }
 0x1b2   :  { %v624_v34 = vadd.f32 %v813_v21, %v613_v33 }
 0x1b4   :  { %v628_v38 = vmax.f32 %v624_v34, 0.0 }
 0x1b6   :  { %v662_v40 = vrot.slane %v628_v38, 5 }
 0x1b8   :  { %v664_v42 = vsel %vm663_vm11, %v662_v40, %v661_v41 }
 0x1b9   :  { %865 = vmatmul.mubr.f32.vlgmr.msra.gmra.mxu1 %v664_v42 }
 0x279   :  { %v732_v44 = vpop.f32.mrf.mxu1 }
 0x27a   :  { %v733_v45 = vadd.f32 %v814_v43, %v732_v44 }
 0x27b   :  { %v866_v46 = vpop.f32.mrf.mxu1 }
 0x27c   :  { %v737_v47 = vsel %vm736_vm2, %v733_v45, -inf }
 0x27d   :  { %738 = vmax.xlane.f32.xlu0 %v737_v47 }
 0x306   :  { %v739_v48 = vpop.xlane.xlu0 %738 }
 0x307   :  { %v740_v49 = vsub.f32 %v733_v45, %v739_v48 }
 0x309   :  { %v741_v5 = vmul.f32 1.442695, %v740_v49 }
 0x30b   :  { %873 = vpow2.f32 %v741_v5 }
 0x318   :  { %v874_v50 = vpop.eup %873 }
 0x319   :  { %v743_v51 = vsel %vm736_vm2, %v874_v50, 0.0 }
 0x31a   :  { %744 = vadd.xlane.f32.xlu1 %v743_v51 }
 0x3a3   :  { %v745_v52 = vpop.xlane.xlu1 %744 }
 0x3a4   :  { %875 = vlog2.f32 %v745_v52 }
 0x3b1   :  { %v876_v53 = vpop.eup %875 }
 0x3b2   :  { %v747_v54 = vmul.f32 0.6931472, %v876_v53 }
 0x3b4   :  { %v748_v55 = vadd.f32 %v747_v54, %v739_v48 }
 0x3b6   :  { %v749_v56 = vsub.f32 %v733_v45, %v748_v55 }
 0x3b8   :  { %750 = vst [vmem:[#allocation2] sm:$0xf] %v749_v56 }
 0x3b9   :  { %888 = shalt.err (!%p885_p4)
}
 0x3ba   :  { %760 = dma.vmem_to_hbm [thread:$0]  %s758_s19, 64, %s1419_s6, [#allocation3]  }
 0x3bb   :  { %897 = dma.done.wait [#allocation3], 64  }
 0x3bc   :  { %898 = vsyncadd [#allocation3], 4294967232 }
 0x3bd   :  { %764 = vsyncpa [#allocation3], 1 }

</bundles_post_ra>
